<compile_context>
chip_gen: v7x
topology: tpu7x:2x2x1
jax: 0.10.0
libtpu: 0.0.40
codegen_flags: <defaults>
</compile_context>

<pallas_src>
import jax
import jax.numpy as jnp
from jax.experimental import pallas as pl
from jax.experimental.pallas import tpu as pltpu


def bilinear_weight_matrix(n_in: int, n_out: int) -> jnp.ndarray:
    """W (n_out, n_in) s.t. y = W @ x matches torch.nn.UpsamplingBilinear2d
    (align_corners=True) along one axis."""
    if n_out == 1:
        src = jnp.zeros((1,), dtype=jnp.float32)
    else:
        src = jnp.arange(n_out, dtype=jnp.float32) * (n_in - 1) / (n_out - 1)
    lo = jnp.clip(jnp.floor(src).astype(jnp.int32), 0, n_in - 1)
    hi = jnp.clip(lo + 1, 0, n_in - 1)
    frac = src - lo.astype(jnp.float32)
    rows = jnp.arange(n_out)
    w = jnp.zeros((n_out, n_in), dtype=jnp.float32)
    w = w.at[rows, lo].add(1.0 - frac)
    w = w.at[rows, hi].add(frac)
    return w


def _bilinear_upsample_kernel(wh_ref, wwt_bd_ref, x_ref, o_ref):
    """One grid step = one (batch, channel-block) slab.

    wh_ref:     (H_out, H_in)                  dense H-interpolation matrix
    wwt_bd_ref: (C_blk*W_in, C_blk*W_out)      block-diag kron(I_Cblk, Ww^T)
    x_ref:      (1, H_in, C_blk*W_in)          channels folded into lanes
    o_ref:      (1, H_out, C_blk*W_out)        lane-dense output tile
    """
    x = x_ref[0]                                                  # (H_in, C_blk*W_in)
    u = jnp.dot(wh_ref[...], x, preferred_element_type=jnp.float32)
    u = u.astype(wwt_bd_ref.dtype)                                # (H_out, C_blk*W_in)
    up = jnp.dot(u, wwt_bd_ref[...], preferred_element_type=jnp.float32)
    o_ref[0] = up.astype(o_ref.dtype)                             # (H_out, C_blk*W_out)


def _choose_channel_block(c1, h_in, w_in, h_out, w_out, itemsize,
                          vmem_budget_bytes=12 << 20, c_cap=32):
    """Largest divisor of c1 (capped) whose tiles are BlockSpec-legal and fit VMEM."""
    def cost(cb):
        in_tile = h_in * cb * w_in * itemsize
        out_tile = h_out * cb * w_out * itemsize
        bd_w = (cb * w_in) * (cb * w_out) * itemsize
        wh_w = h_out * h_in * itemsize
        return 2 * (in_tile + out_tile + bd_w + wh_w)   # double-buffered
    for cb in range(min(c1, c_cap), 0, -1):
        if c1 % cb:
            continue
        # BlockSpec rule: block last dim must be a multiple of 128 unless it
        # spans the full array dim (cb == c1).
        if cb != c1 and ((cb * w_in) % 128 or (cb * w_out) % 128):
            continue
        if cost(cb) <= vmem_budget_bytes:
            return cb
    return c1   # block == full channel dim is always legal


def bilinear_upsample_pallas(x, h_out, w_out):
    """x: (B, C1, H_in, W_in) -> (B, C1, H_out, W_out), align_corners=True bilinear."""
    b, c1, h_in, w_in = x.shape
    w_dtype = x.dtype if jnp.issubdtype(x.dtype, jnp.floating) else jnp.float32

    c_blk = _choose_channel_block(c1, h_in, w_in, h_out, w_out, x.dtype.itemsize)
    n_cblk = c1 // c_blk

    wh = bilinear_weight_matrix(h_in, h_out).astype(w_dtype)        # (H_out, H_in)
    wwt = bilinear_weight_matrix(w_in, w_out).T                     # (W_in, W_out)
    wwt_bd = jnp.kron(jnp.eye(c_blk, dtype=jnp.float32), wwt).astype(w_dtype)

    # Fold channels into the lane (last) dim: (B, H_in, C1*W_in).  This is one
    # cheap XLA pass over the small (pre-upsample) tensor and lets the kernel
    # run fully batched matmuls with zero in-kernel relayouts.
    x_r = jnp.transpose(x, (0, 2, 1, 3)).reshape(b, h_in, c1 * w_in)

    up_r = pl.pallas_call(
        _bilinear_upsample_kernel,
        out_shape=jax.ShapeDtypeStruct((b, h_out, c1 * w_out), x.dtype),
        grid_spec=pltpu.PrefetchScalarGridSpec(
            num_scalar_prefetch=0,
            grid=(b, n_cblk),
            in_specs=[
                # interpolation matrices: constant block, VMEM-resident across grid
                pl.BlockSpec((h_out, h_in), lambda bi, ci: (0, 0)),
                pl.BlockSpec((c_blk * w_in, c_blk * w_out), lambda bi, ci: (0, 0)),
                # x1 channel-block slab (only input actually needed this step)
                pl.BlockSpec((1, h_in, c_blk * w_in), lambda bi, ci: (bi, 0, ci)),
            ],
            out_specs=pl.BlockSpec((1, h_out, c_blk * w_out),
                                   lambda bi, ci: (bi, 0, ci)),
        ),
        compiler_params=pltpu.CompilerParams(
            dimension_semantics=("parallel", "parallel"),
            vmem_limit_bytes=64 << 20),
    )(wh, wwt_bd, x_r)

    # Layout plumbing back to NCHW; fuses with the downstream concat copy.
    return up_r.reshape(b, h_out, c1, w_out).transpose(0, 2, 1, 3)


def decoder_forward(x1, x2, upsampler_scale_factor):
    """x1: (B, C1, H, W), x2: (B, C2, H*s, W*s) -> (B, C1+C2, H*s, W*s)."""
    b, c1, h_in, w_in = x1.shape
    b2, c2, h_out, w_out = x2.shape
    assert b == b2
    # PyTorch: out size = floor(in * scale_factor); must match x2 for the cat.
    assert h_out == int(h_in * upsampler_scale_factor)
    assert w_out == int(w_in * upsampler_scale_factor)
    up = bilinear_upsample_pallas(x1, h_out, w_out)
    # Concat copy intentionally stays in XLA (pure data movement; per review).
    return jnp.concatenate([up, x2], axis=1)


def decoder_reference(x1, x2, upsampler_scale_factor):
    """Pure-JAX reference (matrix-form align_corners=True bilinear + concat)."""
    _, _, h_in, w_in = x1.shape
    h_out = int(h_in * upsampler_scale_factor)
    w_out = int(w_in * upsampler_scale_factor)
    wh = bilinear_weight_matrix(h_in, h_out)
    ww = bilinear_weight_matrix(w_in, w_out)
    up = jnp.einsum("oh,bchw,vw->bcov", wh, x1.astype(jnp.float32), ww)
    return jnp.concatenate([up.astype(x1.dtype), x2], axis=1)


if __name__ == "__main__":
    key = jax.random.PRNGKey(0)
    k1, k2 = jax.random.split(key)

    scale = 2
    B, C1, H, W = 2, 8, 16, 16
    C2 = 8
    x1 = jax.random.normal(k1, (B, C1, H, W), dtype=jnp.float32)
    x2 = jax.random.normal(k2, (B, C2, H * scale, W * scale), dtype=jnp.float32)

    fwd = jax.jit(decoder_forward, static_argnums=2)
    out = jax.block_until_ready(fwd(x1, x2, scale))

    ref = decoder_reference(x1, x2, scale)
    assert out.shape == (B, C1 + C2, H * scale, W * scale), out.shape
    assert jnp.allclose(out, ref, atol=1e-5, rtol=1e-5), float(jnp.max(jnp.abs(out - ref)))

    print("KERNEL_OK")
</pallas_src>

<mosaic_0001>
module attributes {stable_mosaic.version = 11 : i64} {
  func.func private @main(%arg0: i32) attributes {dimension_semantics = [#tpu.dimension_semantics<core_parallel>], iteration_bounds = array<i64: 2>, tpu.core_type = #tpu.core_type<sc_scalar_subcore>, window_params = []} {
    return
  }
}

module attributes {stable_mosaic.version = 11 : i64} {
  func.func private @main(%arg0: i32) attributes {dimension_semantics = [#tpu.dimension_semantics<core_parallel>], iteration_bounds = array<i64: 2>, tpu.core_type = #tpu.core_type<sc_scalar_subcore>, window_params = []} {
    return
  }
}

module attributes {stable_mosaic.version = 11 : i64} {
  func.func @_bilinear_upsample_kernel(%arg0: i32, %arg1: i32, %arg2: memref<32x16xf32, #tpu.memory_space<vmem>>, %arg3: memref<128x256xf32, #tpu.memory_space<vmem>>, %arg4: memref<1x16x128xf32, #tpu.memory_space<vmem>>, %arg5: memref<1x32x256xf32, #tpu.memory_space<vmem>>) attributes {dimension_semantics = [#tpu.dimension_semantics<parallel>, #tpu.dimension_semantics<parallel>], iteration_bounds = array<i64: 2, 1>, scalar_prefetch = 0 : i64, scratch_operands = 0 : i64, tpu.core_type = #tpu.core_type<tc>, window_params = [{pipeline_mode = #tpu.pipeline_mode<synchronous>, transform_indices = @transform_0, window_bounds = array<i64: 32, 16>}, {pipeline_mode = #tpu.pipeline_mode<synchronous>, transform_indices = @transform_1, window_bounds = array<i64: 128, 256>}, {transform_indices = @transform_2, window_bounds = array<i64: 1, 16, 128>}, {transform_indices = @transform_3, window_bounds = array<i64: 1, 32, 256>}]} {
    %c0 = arith.constant 0 : index
    %c0_0 = arith.constant 0 : index
    %c0_1 = arith.constant 0 : index
    %0 = vector.load %arg4[%c0, %c0_0, %c0_1] : memref<1x16x128xf32, #tpu.memory_space<vmem>>, vector<1x16x128xf32>
    %1 = vector.shape_cast %0 : vector<1x16x128xf32> to vector<16x128xf32>
    %c0_2 = arith.constant 0 : index
    %c0_3 = arith.constant 0 : index
    %2 = vector.load %arg2[%c0_2, %c0_3] : memref<32x16xf32, #tpu.memory_space<vmem>>, vector<32x16xf32>
    %cst = arith.constant dense<0.000000e+00> : vector<32x128xf32>
    %3 = tpu.matmul %2, %1, %cst {dimension_numbers = #tpu.dot_dimension_numbers<[1], [0], [0], [1], [0, 0, 1, 1], [], []>} : vector<32x16xf32>, vector<16x128xf32>, vector<32x128xf32> -> vector<32x128xf32>
    %c0_4 = arith.constant 0 : index
    %c0_5 = arith.constant 0 : index
    %4 = vector.load %arg3[%c0_4, %c0_5] : memref<128x256xf32, #tpu.memory_space<vmem>>, vector<128x256xf32>
    %cst_6 = arith.constant dense<0.000000e+00> : vector<32x256xf32>
    %5 = tpu.matmul %3, %4, %cst_6 {dimension_numbers = #tpu.dot_dimension_numbers<[1], [0], [0], [1], [0, 0, 1, 1], [], []>} : vector<32x128xf32>, vector<128x256xf32>, vector<32x256xf32> -> vector<32x256xf32>
    %c0_7 = arith.constant 0 : index
    %c0_8 = arith.constant 0 : index
    %c0_9 = arith.constant 0 : index
    %6 = vector.load %arg5[%c0_7, %c0_8, %c0_9] : memref<1x32x256xf32, #tpu.memory_space<vmem>>, vector<1x32x256xf32>
    %7 = vector.shape_cast %6 : vector<1x32x256xf32> to vector<32x256xf32>
    %8 = vector.shape_cast %5 : vector<32x256xf32> to vector<1x32x256xf32>
    tpu.vector_store %arg5[%c0_7, %c0_8, %c0_9], %8 {strides = array<i32>} : memref<1x32x256xf32, #tpu.memory_space<vmem>>, vector<1x32x256xf32>,
    return
  }
  func.func @transform_0(%arg0: i32, %arg1: i32) -> (i32, i32) {
    %c0_i32 = arith.constant 0 : i32
    %c0_i32_0 = arith.constant 0 : i32
    %c0_i32_1 = arith.constant 0 : i32
    return %c0_i32, %c0_i32_0 : i32, i32
  }
  func.func @transform_1(%arg0: i32, %arg1: i32) -> (i32, i32) {
    %c0_i32 = arith.constant 0 : i32
    %c0_i32_0 = arith.constant 0 : i32
    %c0_i32_1 = arith.constant 0 : i32
    return %c0_i32, %c0_i32_0 : i32, i32
  }
  func.func @transform_2(%arg0: i32, %arg1: i32) -> (i32, i32, i32) {
    %c0_i32 = arith.constant 0 : i32
    %c0_i32_0 = arith.constant 0 : i32
    return %arg0, %c0_i32, %arg1 : i32, i32, i32
  }
  func.func @transform_3(%arg0: i32, %arg1: i32) -> (i32, i32, i32) {
    %c0_i32 = arith.constant 0 : i32
    %c0_i32_0 = arith.constant 0 : i32
    return %arg0, %c0_i32, %arg1 : i32, i32, i32
  }
}

</mosaic_0001>

<bundles_post_ra>
// kernel: decoder_forward.1
= control target key start
LH: loop header
LB: loop body
LE: loop exit
PB: predicated region body
PF: predicated region fallthrough
CT: control target
= control target key end

     0   :  { %8 = vsyncpa [#allocation3], 0  ;;  %s1249_s0 = inlined_call_operand.hbm [shape: f32[32,16], index: 0, kind: input, shape index: {}]   ;;  %s1250_s1 = inlined_call_operand.hbm [shape: f32[128,256], index: 1, kind: input, shape index: {}]   ;;  %s1251_s2 = inlined_call_operand.hbm [shape: f32[2,16,128], index: 2, kind: input, shape index: {}]   ;;  %s1252_s3 = inlined_call_operand.hbm [shape: f32[2,32,256], index: 3, kind: output, shape index: {}]  }
   0x1   :  { %9 = vsyncpa [#allocation6], 0 }
   0x2   :  { %10 = vsyncpa [#allocation4], 0 }
   0x3   :  { %12 = vsyncpa [#allocation4 + $0x1], 0  ;;  %s980_s12 = smov 0   ;;  %s982_s13 = smov 0  }
   0x4   :  { %s984_s14 = smov 0   ;;  %s986_s15 = smov 0  }
   0x5   :  { %s988_s16 = smov 0   ;;  %s990_s17 = smov 0  }
   0x6 LB: > { %s1011_s18 = sadd.s32 4294967295, %s947_s17   ;;  %s589_s19 = sadd.s32 4294967294, %s947_s17   ;;  %s947_s17 = sphi %s990_s17, %s18_s17   ;;  %s943_s16 = sphi %s988_s16, %s1277_s16   ;;  %s939_s15 = sphi %s986_s15, %s1276_s15   ;;  %s935_s14 = sphi %s984_s14, %s1275_s14   ;;  %s931_s13 = sphi %s982_s13, %s1274_s13   ;;  %s927_s12 = sphi %s980_s12, %s1273_s12  }
   0x7   : > { %p88_p0 = scmp.ne.s32.totalorder %s935_s14, %s931_s13  ;;  %p89_p1 = scmp.eq.s32.totalorder %s947_s17, 0 }
   0x8   : > { %p94_p2 = scmp.ne.s32.totalorder %s931_s13, %s927_s12  ;;  %p1253_p3 = scmp.eq.s32.totalorder %s1011_s18, 0 }
   0x9   : > { %p1020_p4 = por %p89_p1, %p88_p0  ;;  %p120_p5 = scmp.eq.s32.totalorder %s1011_s18, 1 }
   0xa   : > { %p1027_p6 = por %p1253_p3, %p94_p2  ;;  %p126_p7 = scmp.eq.s32.totalorder %s589_s19, 1 }
   0xb   : > { %p1031_p8 = por %p120_p5, %p88_p0  ;;  %p590_p9 = scmp.ge.s32.totalorder %s947_s17, 1 }
   0xc   : > { %s1258_s21 = scalar_select %p1027_p6, 1, 0 }
   0xd   : > { %s1259_s22 = scalar_select %p1031_p8, 1, 0 }
   0xe   : > { %p1036_p10 = por %p126_p7, %p94_p2  ;;  %p133_p11 = scmp.lt.s32.totalorder %s947_s17, 3 }
   0xf   : > { %s949_s25 = smov [#allocation2]   ;;  %p710_p1 = scmp.lt.s32.totalorder %s947_s17, 2 }
  0x10   : > { %s1260_s23 = scalar_select %p1036_p10, 1, 0 }
  0x11   : > { %p1041_p12 = pnand %p590_p9, %p133_p11  ;;  %s145_s26 = sshll.u32 %s949_s25, 4  ;;  %s1045_s26 = int_to_ptr.vmem [resolvable:$true] %s145_s26 }
  0x12   : > { %p1059_p2 = pnand %p710_p1, %p1020_p4  ;;  %s950_s29 = smov [#allocation5]  }
  0x13   : > { %p693_p13 = pneg %p1041_p12  ;;  %s158_s30 = sshll.u32 %s950_s29, 4  ;;  %s1063_s30 = int_to_ptr.vmem [resolvable:$true] %s158_s30 }
  0x14   : > { %s771_s6 = scalar_lea.hbm %s1249_s0, 512 }
  0x15   : > { %p1053_p5 = pnand %p693_p13, %p1253_p3  ;;  %p772_p7 = scmp.ne.s32.totalorder %s1249_s0, %s771_s6 }
  0x16   : > { %p778_p13 = scmp.lt.u32.totalorder %s771_s6, %s1249_s0 }
  0x17   : > { %p773_p9 = pneg %p1053_p5 }
  0x19   : > { %p774_p4 = pnand %p773_p9, %p772_p7 }
  0x1b   : > { %p775_p11 = pneg %p774_p4 }
  0x1d   : > { %p780_p1 = pnand %p778_p13, %p775_p11 }
  0x1f   : > { %783 = shalt.err (!%p780_p1)
}
  0x20   : > { %s784_s11 = scalar_lea.vmem %s1045_s26, 512  ;;  %p792_p8 = scmp.lt.s32.totalorder %s1045_s26, %s1045_s26 }
  0x21   : > { %p785_p0 = scmp.ne.s32.totalorder %s1045_s26, %s784_s11  ;;  %p793_p7 = scmp.lt.s32.totalorder %s784_s11, %s784_s11 }
  0x23   : > { %p787_p3 = pnand %p785_p0, %p773_p9  ;;  %p794_p4 = por %p793_p7, %p792_p8 }
  0x25   : > { %p788_p10 = pneg %p787_p3 }
  0x27   : > { %p795_p6 = pnand %p794_p4, %p788_p10 }
  0x29   : > { %798 = shalt.err (!%p795_p6)
}
  0x2a   : > { %s1256_s19 = smov 128   ;;  %s952_s20 = smov 8  }
  0x2b   : > { %696 = dma.hbm_to_vmem [thread:$0]  (!%p1053_p5), %s1249_s0, 512, %s1045_s26, [#allocation3], %s1256_s19, %s1256_s19, %s952_s20  }
  0x2c   : > { %s799_s6 = scalar_lea.hbm %s1250_s1, 4096 }
  0x2d   : > { %p800_p3 = scmp.ne.s32.totalorder %s1250_s1, %s799_s6  ;;  %p806_p10 = scmp.lt.u32.totalorder %s799_s6, %s1250_s1 }
  0x2f   : > { %p802_p6 = pnand %p800_p3, %p773_p9 }
  0x31   : > { %p803_p8 = pneg %p802_p6 }
  0x33   : > { %p808_p0 = pnand %p806_p10, %p803_p8 }
  0x35   : > { %811 = shalt.err (!%p808_p0)
}
  0x36   : > { %s812_s26 = scalar_lea.vmem %s1063_s30, 4096  ;;  %p820_p7 = scmp.lt.s32.totalorder %s1063_s30, %s1063_s30 }
  0x37   : > { %p813_p11 = scmp.ne.s32.totalorder %s1063_s30, %s812_s26  ;;  %p821_p4 = scmp.lt.s32.totalorder %s812_s26, %s812_s26 }
  0x39   : > { %p815_p13 = pnand %p813_p11, %p773_p9  ;;  %p822_p3 = por %p821_p4, %p820_p7 }
  0x3b   : > { %p816_p1 = pneg %p815_p13 }
  0x3d   : > { %p823_p6 = pnand %p822_p3, %p816_p1 }
  0x3f   : > { %826 = shalt.err (!%p823_p6)
}
  0x40   : > { %s953_s11 = smov 256   ;;  %s954_s25 = smov 16  }
  0x41   : > { %699 = dma.hbm_to_vmem [thread:$0]  (!%p1053_p5), %s1250_s1, 4096, %s1063_s30, [#allocation6], %s953_s11, %s953_s11, %s954_s25  }
  0x42   : > { %s81_s5 = sadd.s32 1, %s935_s14  ;;  %s30_s6 = sadd.s32 1, %s943_s16 }
  0x43   : > { %s172_s7 = sand.u32 1, %s947_s17   ;;  %p32_p9 = scmp.ge.s32.totalorder %s30_s6, 2 }
  0x44   : > { %s174_s8 = sand.u32 1, %s935_s14   ;;  %s611_s9 = sshll.u32 %s943_s16, 8 }
  0x45   : > { %s1279_s6 = smov (%p32_p9, %s30_s6), 0  ;;  %s594_s10 = sshll.u32 %s174_s8, 4 }
  0x46   : > { %s1130_s27 = scalar_lea.hbm %s1251_s2, %s611_s9  ;;  %s76_s30 = ssub.s32 %s943_s16, %s1279_s6 }
  0x47   : > { %p79_p5 = scmp.eq.s32.totalorder %s76_s30, 0  ;;  %s176_s11 = scalar_lea.vmem [#allocation7], %s594_s10 }
  0x48   : > { %s184_s25 = sshll.u32 %s176_s11, 4  ;;  %s1139_s4 = scalar_lea.sflag [#allocation3], %s172_s7  ;;  %s1134_s25 = int_to_ptr.vmem [resolvable:$true] %s184_s25 }
  0x49   : > { %s1137_s29 = scalar_select %p79_p5, %s935_s14, %s81_s5  }
  0x4a   : > { %s827_s8 = scalar_lea.hbm %s1130_s27, 256  ;;  %p829_p10 = pneg %p1059_p2 }
  0x4b   : > { %p828_p8 = scmp.ne.s32.totalorder %s1130_s27, %s827_s8  ;;  %s832_s26 = scalar_lea.hbm %s1251_s2, 512 }
  0x4c   : > { %p833_p13 = scmp.lt.u32.totalorder %s1130_s27, %s1251_s2  ;;  %p834_p1 = scmp.lt.u32.totalorder %s832_s26, %s827_s8 }
  0x4d   : > { %p830_p0 = pnand %p829_p10, %p828_p8  ;;  %p836_p4 = scmp.lt.u32.totalorder %s827_s8, %s1130_s27 }
  0x4e   : > { %p835_p7 = por %p834_p1, %p833_p13 }
  0x4f   : > { %p831_p11 = pneg %p830_p0 }
  0x50   : > { %p837_p3 = por %p836_p4, %p835_p7 }
  0x52   : > { %p838_p6 = pnand %p837_p3, %p831_p11 }
  0x54   : > { %841 = shalt.err (!%p838_p6)
}
  0x55   : > { %s842_s5 = scalar_lea.vmem %s1134_s25, 256  ;;  %s955_s7 = smov [#allocation7]  }
  0x56   : > { %p843_p9 = scmp.ne.s32.totalorder %s1134_s25, %s842_s5  ;;  %s847_s11 = sshll.u32 %s955_s7, 4  ;;  %s848_s11 = int_to_ptr.vmem [resolvable:$false] %s847_s11 }
  0x57   : > { %s849_s19 = scalar_lea.vmem %s848_s11, 512  ;;  %p850_p0 = scmp.lt.s32.totalorder %s1134_s25, %s848_s11 }
  0x58   : > { %p845_p5 = pnand %p843_p9, %p829_p10  ;;  %p851_p13 = scmp.lt.s32.totalorder %s849_s19, %s842_s5 }
  0x5a   : > { %p846_p8 = pneg %p845_p5  ;;  %p852_p1 = por %p851_p13, %p850_p0 }
  0x5c   : > { %p853_p7 = pnand %p852_p1, %p846_p8 }
  0x5e   : > { %856 = shalt.err (!%p853_p7)
}
  0x5f   : > { %s1264_s8 = smov 128   ;;  %196 = sbr.rel (%p1041_p12) target bundleno = 567 (0x237), region = 32 }
  0x60   : > { %703 = dma.hbm_to_vmem [thread:$0]  (!%p1059_p2), %s1130_s27, 256, %s1134_s25, %s1139_s4, %s1264_s8, %s1264_s8, %s952_s20  }
  0x61   : > { %p1265_p10 = scmp.eq.s32.totalorder (!%p1041_p12), %s1011_s18, 0 }
  0x66   : > { %910 = dma.done.wait (%p1265_p10), [#allocation3], 512   ;;  %p1266_p11 = pmov %p1265_p10 }
  0x67   : > { %p1267_p4 = pmov %p1265_p10 }
  0x68   : > { %912 = vsyncadd (%p1266_p11), [#allocation3], 4294966784 }
  0x69   : > { %914 = dma.done.wait (%p1267_p4), [#allocation6], 4096   ;;  %p1268_p3 = pmov %p1267_p4 }
  0x6a   : > { %s206_s28 = sand.u32 1, %s1011_s18   ;;  %s1182_s20 = sand.u32 1, %s931_s13  }
  0x6b   : > { %916 = vsyncadd (%p1268_p3), [#allocation6], 4294963200  ;;  %s600_s24 = sshll.u32 %s1182_s20, 4  ;;  %s207_s27 = scalar_lea.sflag [#allocation3], %s206_s28 }
  0x6c   : > { %s210_s25 = scalar_lea.vmem [#allocation7], %s600_s24  ;;  %p1269_p12 = scmp.ne.s32.totalorder %s1258_s21, 0 }
  0x6e   : > { %918 = dma.done.wait (%p1269_p12), %s207_s27, 256  }
  0x6f   : > { %920 = vsyncadd (%p1269_p12), %s207_s27, 4294967040  ;;  %vm240_vm0 = vcmask 130048   ;;  %v234_v0 = vld [vmem:[%s210_s25] sm:$0xff]  ;;  %v235_v1 = vld [vmem:[%s210_s25 + $0x8] sm:$0xff]  ;;  %v956_v55 = vmov 0.0   ;;  %s601_s18 = sshll.u32 %s1182_s20, 6 }
  0x70   : > { %v236_v2 = vld [vmem:[#allocation2] sm:$0xff]  ;;  %v629_v3 = vpack.c.bf16 %v235_v1, %v234_v0  ;;  %v237_v4 = vld [vmem:[#allocation2 + $0x8] sm:$0xff]  ;;  %v341_v6 = vld [vmem:[#allocation5 + $0x18] sm:$0xff]  ;;  %440 = vmatprep.mubr.f32.mxu1 %v956_v55  ;;  %s232_s21 = scalar_lea.vmem [#allocation8], %s601_s18  ;;  %s612_s9 = sshll.u32 %s939_s15, 10 }
  0x71   : > { %623 = vmatprep.mubr.msk.f32.mxu0 %vm240_vm0, %v236_v2  ;;  %v339_v5 = vld [vmem:[#allocation5 + $0x8] sm:$0xff]  ;;  %v338_v7 = vld [vmem:[#allocation5] sm:$0xff]  ;;  %v340_v9 = vld [vmem:[#allocation5 + $0x10] sm:$0xff]  ;;  %s483_s4 = sshll.u32 %s232_s21, 4  ;;  %s1200_s30 = scalar_lea.hbm %s1252_s3, %s612_s9  ;;  %s1195_s4 = int_to_ptr.vmem [resolvable:$true] %s483_s4 }
  0x72   : > { %630 = vmatprep.subr.bf16.mxu0 %v629_v3  ;;  %v633_v8 = vpack.c.bf16 %v341_v6, %v339_v5  ;;  %v343_v10 = vld [vmem:[#allocation5 + $0x28] sm:$0xff]  ;;  %v345_v11 = vld [vmem:[#allocation5 + $0x38] sm:$0xff]  ;;  %v635_v12 = vpack.c.bf16 %v340_v9, %v338_v7  ;;  %v342_v14 = vld [vmem:[#allocation5 + $0x20] sm:$0xff]  ;;  %s468_s5 = scalar_lea.sflag [#allocation4], %s1182_s20  ;;  %s857_s7 = scalar_lea.vmem %s1195_s4, 1024 }
  0x73   : > { %632 = vmatpush3.bf16.msra.mxu0 %v629_v3  ;;  %v637_v13 = vpack.c.bf16 %v345_v11, %v343_v10  ;;  %v344_v15 = vld [vmem:[#allocation5 + $0x30] sm:$0xff]  ;;  %v347_v16 = vld [vmem:[#allocation5 + $0x48] sm:$0xff]  ;;  %v349_v18 = vld [vmem:[#allocation5 + $0x58] sm:$0xff]  ;;  %p858_p2 = scmp.ne.s32.totalorder %s1195_s4, %s857_s7  ;;  %p1270_p6 = scmp.ne.s32.totalorder %s1259_s22, 0 }
  0x74   : > { %v238_v17 = vld [vmem:[#allocation2 + $0x10] sm:$0xff]  ;;  %665 = vmatprep.subr.bf16.mxu1 %v633_v8  ;;  %634 = vmatprep.subr.bf16.mxu0 %v633_v8  ;;  %v639_v19 = vpack.c.bf16 %v344_v15, %v342_v14  ;;  %v641_v20 = vpack.c.bf16 %v349_v18, %v347_v16  ;;  %v346_v21 = vld [vmem:[#allocation5 + $0x40] sm:$0xff]  ;;  %v239_v23 = vld [vmem:[#allocation2 + $0x18] sm:$0xff]  ;;  %s957_s15 = smov [#allocation8]  }
  0x75   : > { %673 = vmatpush1.bf16.msra.mxu1 %v635_v12  ;;  %v348_v22 = vld [vmem:[#allocation5 + $0x50] sm:$0xff]  ;;  %v351_v24 = vld [vmem:[#allocation5 + $0x68] sm:$0xff]  ;;  %v353_v25 = vld [vmem:[#allocation5 + $0x78] sm:$0xff]  ;;  %p859_p9 = pnand %p858_p2, %p1270_p6  ;;  %s861_s11 = sshll.u32 %s957_s15, 4  ;;  %s862_s11 = int_to_ptr.vmem [resolvable:$false] %s861_s11 }
  0x76   : > { %624 = vmatmul.mubr.msk.f32.vlgmr.msra.gmra.mrb[0].mxu0 %vm240_vm0, %v237_v4  ;;  %666 = vmatprep.subr.bf16.mxu1 %v637_v13  ;;  %v643_v26 = vpack.c.bf16 %v348_v22, %v346_v21  ;;  %v645_v27 = vpack.c.bf16 %v353_v25, %v351_v24  ;;  %v350_v28 = vld [vmem:[#allocation5 + $0x60] sm:$0xff]  ;;  %v352_v29 = vld [vmem:[#allocation5 + $0x70] sm:$0xff]  ;;  %v355_v30 = vld [vmem:[#allocation5 + $0x88] sm:$0xff]  ;;  %s863_s19 = scalar_lea.vmem %s862_s11, 2048  ;;  %p864_p8 = scmp.lt.s32.totalorder %s1195_s4, %s862_s11 }
  0x77   : > { %626 = vmatprep.mubr.msk.f32.mxu0 %vm240_vm0, %v238_v17  ;;  %636 = vmatpush1.bf16.msra.mxu0 %v635_v12  ;;  %v357_v31 = vld [vmem:[#allocation5 + $0x98] sm:$0xff]  ;;  %v647_v32 = vpack.c.bf16 %v352_v29, %v350_v28  ;;  %v354_v34 = vld [vmem:[#allocation5 + $0x80] sm:$0xff]  ;;  %v356_v35 = vld [vmem:[#allocation5 + $0x90] sm:$0xff]  ;;  %p860_p5 = pneg %p859_p9  ;;  %p865_p0 = scmp.lt.s32.totalorder %s863_s19, %s857_s7 }
  0x78   : > { %638 = vmatprep.subr.bf16.mxu0 %v637_v13  ;;  %v649_v33 = vpack.c.bf16 %v357_v31, %v355_v30  ;;  %v359_v36 = vld [vmem:[#allocation5 + $0xa8] sm:$0xff]  ;;  %v361_v37 = vld [vmem:[#allocation5 + $0xb8] sm:$0xff]  ;;  %v651_v38 = vpack.c.bf16 %v356_v35, %v354_v34  ;;  %v358_v40 = vld [vmem:[#allocation5 + $0xa0] sm:$0xff] }
  0x79   : > { %674 = vmatpush1.bf16.msra.mxu1 %v639_v19  ;;  %v653_v39 = vpack.c.bf16 %v361_v37, %v359_v36  ;;  %v360_v41 = vld [vmem:[#allocation5 + $0xb0] sm:$0xff]  ;;  %v363_v42 = vld [vmem:[#allocation5 + $0xc8] sm:$0xff]  ;;  %v365_v43 = vld [vmem:[#allocation5 + $0xd8] sm:$0xff]  ;;  %p866_p13 = por %p865_p0, %p864_p8 }
  0x7a   : > { %627 = vmatmul.mubr.msk.f32.gmra.mrb[2].mxu0 %vm240_vm0, %v239_v23  ;;  %667 = vmatprep.subr.bf16.mxu1 %v641_v20  ;;  %v655_v44 = vpack.c.bf16 %v360_v41, %v358_v40  ;;  %v657_v45 = vpack.c.bf16 %v365_v43, %v363_v42  ;;  %v362_v46 = vld [vmem:[#allocation5 + $0xc0] sm:$0xff]  ;;  %v364_v47 = vld [vmem:[#allocation5 + $0xd0] sm:$0xff]  ;;  %v367_v48 = vld [vmem:[#allocation5 + $0xe8] sm:$0xff] }
  0x7b   : > { %640 = vmatpush1.bf16.msra.mxu0 %v639_v19  ;;  %v369_v49 = vld [vmem:[#allocation5 + $0xf8] sm:$0xff]  ;;  %v659_v50 = vpack.c.bf16 %v364_v47, %v362_v46  ;;  %v366_v52 = vld [vmem:[#allocation5 + $0xe0] sm:$0xff]  ;;  %v368_v53 = vld [vmem:[#allocation5 + $0xf0] sm:$0xff]  ;;  %434 = vmatprep.mubr.f32.mxu0 %v956_v55  ;;  %p867_p1 = pnand %p866_p13, %p860_p5 }
  0x7c   : > { %642 = vmatprep.subr.bf16.mxu0 %v641_v20  ;;  %v661_v51 = vpack.c.bf16 %v369_v49, %v367_v48  ;;  %v663_v54 = vpack.c.bf16 %v368_v53, %v366_v52 }
  0x7d   : > { %675 = vmatpush1.bf16.msra.mxu1 %v643_v26 }
  0x7e   : > { %668 = vmatprep.subr.bf16.mxu1 %v645_v27 }
  0x7f   : > { %644 = vmatpush1.bf16.msra.mxu0 %v643_v26 }
  0x80   : > { %646 = vmatprep.subr.bf16.mxu0 %v645_v27 }
  0x81   : > { %676 = vmatpush1.bf16.msra.mxu1 %v647_v32 }
  0x82   : > { %669 = vmatprep.subr.bf16.mxu1 %v649_v33 }
  0x83   : > { %648 = vmatpush1.bf16.msra.mxu0 %v647_v32 }
  0x84   : > { %650 = vmatprep.subr.bf16.mxu0 %v649_v33 }
  0x85   : > { %677 = vmatpush1.bf16.msra.mxu1 %v651_v38 }
  0x86   : > { %670 = vmatprep.subr.bf16.mxu1 %v653_v39 }
  0x87   : > { %652 = vmatpush1.bf16.msra.mxu0 %v651_v38 }
  0x88   : > { %654 = vmatprep.subr.bf16.mxu0 %v653_v39 }
  0x89   : > { %678 = vmatpush1.bf16.msra.mxu1 %v655_v44 }
  0x8a   : > { %671 = vmatprep.subr.bf16.mxu1 %v657_v45 }
  0x8b   : > { %656 = vmatpush1.bf16.msra.mxu0 %v655_v44 }
  0x8c   : > { %658 = vmatprep.subr.bf16.mxu0 %v657_v45 }
  0x8d   : > { %679 = vmatpush1.bf16.msra.mxu1 %v659_v50 }
  0x8e   : > { %672 = vmatprep.subr.bf16.mxu1 %v661_v51 }
  0x8f   : > { %660 = vmatpush1.bf16.msra.mxu0 %v659_v50 }
  0x90   : > { %662 = vmatprep.subr.bf16.mxu0 %v661_v51 }
  0x91   : > { %680 = vmatpush1.bf16.msra.mxu1 %v663_v54 }
  0x93   : > { %664 = vmatpush1.bf16.msra.mxu0 %v663_v54 }
 0x149   : > { %v625_v56 = vpop.f32.mrb[0].mxu0 }
 0x14a   : > { %v319_v57 = vpop.f32.mrb[1].mxu0  ;;  %441 = vmatmul.mubr.f32.vlgmr.msra.gmra.mrb[0].mxu1 %v625_v56 }
 0x14b   : > { %435 = vmatmul.mubr.f32.vlgmr.msra.gmra.mrb[4].mxu0 %v319_v57  ;;  %446 = vmatprep.mubr.f32.mxu1 %v956_v55 }
 0x14d   : > { %v628_v58 = vpop.f32.mrb[2].mxu0 }
 0x14e   : > { %v329_v59 = vpop.f32.mrb[3].mxu0 }
 0x14f   : > { %447 = vmatmul.mubr.f32.gmra.mrb[2].mxu1 %v329_v59 }
 0x150   : > { %452 = vmatprep.mubr.f32.mxu1 %v956_v55 }
 0x153   : > { %453 = vmatmul.mubr.f32.gmra.mrb[4].mxu1 %v628_v58 }
 0x21d   : > { %v442_v60 = vpop.f32.mrb[0].mxu1 }
 0x21e   : > { %461 = vst [vmem:[%s232_s21 + $0x10] sm:$0xff] %v442_v60  ;;  %v436_v61 = vpop.f32.mrb[4].mxu0  ;;  %v444_v62 = vpop.f32.mrb[1].mxu1 }
 0x21f   : > { %459 = vst [vmem:[%s232_s21] sm:$0xff] %v436_v61  ;;  %462 = vst [vmem:[%s232_s21 + $0x18] sm:$0xff] %v444_v62  ;;  %v438_v63 = vpop.f32.mrb[5].mxu0 }
 0x220   : > { %460 = vst [vmem:[%s232_s21 + $0x8] sm:$0xff] %v438_v63 }
 0x222   : > { %v448_v0 = vpop.f32.mrb[2].mxu1 }
 0x223   : > { %463 = vst [vmem:[%s232_s21 + $0x20] sm:$0xff] %v448_v0  ;;  %v450_v1 = vpop.f32.mrb[3].mxu1 }
 0x224   : > { %464 = vst [vmem:[%s232_s21 + $0x28] sm:$0xff] %v450_v1 }
 0x226   : > { %v454_v2 = vpop.f32.mrb[4].mxu1 }
 0x227   : > { %465 = vst [vmem:[%s232_s21 + $0x30] sm:$0xff] %v454_v2  ;;  %v456_v3 = vpop.f32.mrb[5].mxu1 }
 0x228   : > { %466 = vst [vmem:[%s232_s21 + $0x38] sm:$0xff] %v456_v3 }
 0x229   : > { %870 = shalt.err (!%p867_p1)
}
 0x22a   : > { %s871_s8 = scalar_lea.hbm %s1200_s30, 1024  ;;  %s875_s27 = scalar_lea.hbm %s1252_s3, 2048 }
 0x22b   : > { %p872_p7 = scmp.ne.s32.totalorder %s1200_s30, %s871_s8  ;;  %p876_p4 = scmp.lt.u32.totalorder %s1200_s30, %s1252_s3 }
 0x22c   : > { %p877_p3 = scmp.lt.u32.totalorder %s875_s27, %s871_s8  ;;  %p879_p2 = scmp.lt.u32.totalorder %s871_s8, %s1200_s30 }
 0x22d   : > { %p873_p10 = pnand %p872_p7, %p1270_p6 }
 0x22e   : > { %p878_p12 = por %p877_p3, %p876_p4 }
 0x22f   : > { %p874_p11 = pneg %p873_p10 }
 0x230   : > { %p880_p9 = por %p879_p2, %p878_p12 }
 0x232   : > { %p881_p5 = pnand %p880_p9, %p874_p11 }
 0x234   : > { %884 = shalt.err (!%p881_p5)
}
 0x235   : > { %s958_s21 = smov 256   ;;  %s959_s9 = smov 16  }
 0x236   : > { %691 = dma.vmem_to_hbm [thread:$0]  (%p1270_p6), %s1195_s4, 1024, %s1200_s30, %s468_s5, %s958_s21, %s958_s21, %s959_s9  }
 0x237 PF: > { %s498_s26 = sand.u32 1, %s927_s12   ;;  %p1271_p8 = scmp.ne.s32.totalorder %s1260_s23, 0 }
 0x238   : > { %p1272_p0 = scmp.ge.s32.totalorder %s947_s17, 2  ;;  %s499_s10 = scalar_lea.sflag [#allocation4], %s498_s26 }
 0x23a   : > { %p705_p13 = pnand %p1272_p0, %p1271_p8 }
 0x23c   : > { %922 = dma.done.wait (!%p705_p13), %s499_s10, 1024  }
 0x23d   : > { %924 = vsyncadd (!%p705_p13), %s499_s10, 4294966272  ;;  %s18_s17 = sadd.s32 1, %s947_s17   ;;  %s1273_s12 = smov %s931_s13 }
 0x23e   : > { %p15_p1 = scmp.ge.s32.totalorder %s18_s17, 4   ;;  %s1274_s13 = smov %s935_s14 }
 0x23f   : > { %s1275_s14 = smov %s1137_s29  ;;  %s1276_s15 = smov %s943_s16 }
 0x240   : > { %s1277_s16 = smov %s1279_s6  ;;  %17 = sbr.rel (!%p15_p1) target bundleno = 6 (0x6), region = 84 }
 0x247   :  { %504 = vsyncpa [#allocation3], 1 }
 0x248   :  { %506 = vsyncpa [#allocation3 + $0x1], 1 }
 0x249   :  { %507 = vsyncpa [#allocation6], 1 }
 0x24a   :  { %508 = vsyncpa [#allocation4], 1 }
 0x24b   :  { %510 = vsyncpa [#allocation4 + $0x1], 1 }

</bundles_post_ra>
